<compile_context>
chip_gen: v7x
topology: tpu7x:2x2x1
jax: 0.10.0
libtpu: 0.0.40
codegen_flags: <defaults>
</compile_context>

<pallas_src>
import math

import jax
import jax.numpy as jnp
from jax.experimental import pallas as pl
from jax.experimental.pallas import tpu as pltpu


_LANE = 128


# ----------------------------------------------------------------------------
# Primary path: single HBM -> HBM DMA (no VMEM staging).
# ----------------------------------------------------------------------------
def _dma_copy_kernel(x_hbm, o_hbm, sem):
    cp = pltpu.make_async_copy(x_hbm, o_hbm, sem)
    cp.start()
    cp.wait()


def _flatten_via_hbm_dma(x2d):
    rows, cols = x2d.shape
    itemsize = jnp.dtype(x2d.dtype).itemsize
    return pl.pallas_call(
        _dma_copy_kernel,
        out_shape=jax.ShapeDtypeStruct((rows, cols), x2d.dtype),
        in_specs=[pl.BlockSpec(memory_space=pl.ANY)],
        out_specs=pl.BlockSpec(memory_space=pl.ANY),
        scratch_shapes=[pltpu.SemaphoreType.DMA],
        cost_estimate=pl.CostEstimate(
            flops=0,
            transcendentals=0,
            bytes_accessed=2 * rows * cols * itemsize,
        ),
    )(x2d)


# ----------------------------------------------------------------------------
# Fallback path: lane-dense VMEM-tiled copy (generation-aware block sizes).
# ----------------------------------------------------------------------------
def _vmem_copy_kernel(x_ref, o_ref):
    o_ref[...] = x_ref[...]


def _block_budget_bytes():
    """(per-buffer block bytes, scoped vmem limit) chosen per TPU generation."""
    try:
        vmem = pltpu.get_tpu_info().vmem_capacity_bytes
    except Exception:
        vmem = 64 * 1024 * 1024
    if vmem >= 128 * 1024 * 1024:                       # v5e / v6e
        return 8 * 1024 * 1024, 64 * 1024 * 1024
    return 4 * 1024 * 1024, 48 * 1024 * 1024            # v7x (64 MiB VMEM/TC)


def _flatten_via_tiled_copy(x2d):
    B, N = x2d.shape
    total = B * N
    itemsize = jnp.dtype(x2d.dtype).itemsize
    if itemsize not in (1, 2, 4):
        raise NotImplementedError(
            "tiled fallback supports 1/2/4-byte dtypes only (TPU vreg packing)")
    sub = {4: 8, 2: 16, 1: 32}[itemsize]                # native sublane tile
    block_bytes, vmem_limit = _block_budget_bytes()

    x_flat = x2d.reshape(-1)                            # metadata-only

    # Pick a lane width that exactly divides the flat length (widest first,
    # preferring row counts that are a multiple of the sublane tile).
    lanes = None
    for cand in (4096, 2048, 1024, 512, 256, 128):
        if total % cand == 0 and (total // cand) % sub == 0:
            lanes = cand
            break
    if lanes is None:
        for cand in (4096, 2048, 1024, 512, 256, 128):
            if total % cand == 0:
                lanes = cand
                break
    if lanes is not None:
        main, tail = total, 0
    else:
        # Ragged: kernel-copy the (sub*128)-aligned prefix, append the tail.
        lanes = _LANE
        tile = sub * _LANE
        main = (total // tile) * tile
        tail = total - main

    if main == 0:
        # Tiny tensor: nothing lane-aligned to copy; flatten is metadata-only.
        return x2d

    rows = main // lanes
    max_rows = max(sub, (block_bytes // (lanes * itemsize)) // sub * sub)
    block_rows = min(rows, max_rows)

    out2d = pl.pallas_call(
        _vmem_copy_kernel,
        out_shape=jax.ShapeDtypeStruct((rows, lanes), x2d.dtype),
        grid_spec=pltpu.PrefetchScalarGridSpec(
            num_scalar_prefetch=0,
            grid=(pl.cdiv(rows, block_rows),),
            in_specs=[pl.BlockSpec((block_rows, lanes), lambda i: (i, 0))],
            out_specs=pl.BlockSpec((block_rows, lanes), lambda i: (i, 0)),
        ),
        compiler_params=pltpu.CompilerParams(
            dimension_semantics=("parallel",),
            vmem_limit_bytes=vmem_limit,
        ),
        cost_estimate=pl.CostEstimate(
            flops=0, transcendentals=0, bytes_accessed=2 * main * itemsize),
    )(x_flat[:main].reshape(rows, lanes))

    out_flat = out2d.reshape(-1)
    if tail:
        # TODO(synk): a production version would write the tail via a second
        # masked block inside the kernel instead of this small concat copy.
        out_flat = jnp.concatenate([out_flat, x_flat[main:]])
    return out_flat.reshape(B, N)


# ----------------------------------------------------------------------------
# Public wrapper: nn.Flatten(start_dim=1, end_dim=-1)
# ----------------------------------------------------------------------------
@jax.jit
def _flatten_dma_jit(x):
    B = x.shape[0]
    N = math.prod(x.shape[1:])
    return _flatten_via_hbm_dma(x.reshape(B, N))        # reshape is metadata-only


@jax.jit
def _flatten_tiled_jit(x):
    B = x.shape[0]
    N = math.prod(x.shape[1:])
    return _flatten_via_tiled_copy(x.reshape(B, N))


def flatten_extractor(x: jax.Array) -> jax.Array:
    """Equivalent of nn.Flatten(start_dim=1, end_dim=-1): (B, ...) -> (B, prod(...))."""
    try:
        y = _flatten_dma_jit(x)
        jax.block_until_ready(y)
        return y
    except Exception:
        # Safety net: lane-dense tiled copy (should not normally be needed).
        return _flatten_tiled_jit(x)


if __name__ == "__main__":
    key = jax.random.PRNGKey(0)
    B, C, H, W = 2, 4, 16, 16
    x = jax.random.normal(key, (B, C, H, W), dtype=jnp.float32)

    y = flatten_extractor(x)
    jax.block_until_ready(y)

    # Reference: same element order as torch.flatten(x, 1) on contiguous NCHW.
    y_ref = x.reshape(B, C * H * W)
    assert y.shape == (B, C * H * W), y.shape
    assert jnp.array_equal(y, y_ref), "mismatch vs reference flatten"

    print("KERNEL_OK")
</pallas_src>

<mosaic_0001>
module attributes {stable_mosaic.version = 11 : i64} {
  func.func @_dma_copy_kernel(%arg0: memref<2x1024xf32, #tpu.memory_space<any>>, %arg1: memref<2x1024xf32, #tpu.memory_space<any>>, %arg2: memref<!tpu.dma_semaphore, #tpu.memory_space<semaphore_mem>>) attributes {dimension_semantics = [], scalar_prefetch = 0 : i64, scratch_operands = 1 : i64, tpu.core_type = #tpu.core_type<tc>} {
    tpu.enqueue_dma source(%arg0 : memref<2x1024xf32, #tpu.memory_space<any>>) target(%arg1 : memref<2x1024xf32, #tpu.memory_space<any>>) target_semaphore(%arg2 : memref<!tpu.dma_semaphore, #tpu.memory_space<semaphore_mem>>)
    tpu.wait_dma2 semaphore(%arg2 : memref<!tpu.dma_semaphore, #tpu.memory_space<semaphore_mem>>) src(%arg0 : memref<2x1024xf32, #tpu.memory_space<any>>) dst(%arg1 : memref<2x1024xf32, #tpu.memory_space<any>>)
    return
  }
}

module attributes {stable_mosaic.version = 11 : i64} {
  func.func @_vmem_copy_kernel(%arg0: i32, %arg1: memref<8x256xf32, #tpu.memory_space<vmem>>, %arg2: memref<8x256xf32, #tpu.memory_space<vmem>>) attributes {dimension_semantics = [#tpu.dimension_semantics<parallel>], iteration_bounds = array<i64: 1>, scalar_prefetch = 0 : i64, scratch_operands = 0 : i64, tpu.core_type = #tpu.core_type<tc>, window_params = [{transform_indices = @transform_0, window_bounds = array<i64: 8, 256>}, {transform_indices = @transform_1, window_bounds = array<i64: 8, 256>}]} {
    %c0 = arith.constant 0 : index
    %c0_0 = arith.constant 0 : index
    %0 = vector.load %arg1[%c0, %c0_0] : memref<8x256xf32, #tpu.memory_space<vmem>>, vector<8x256xf32>
    %c0_1 = arith.constant 0 : index
    %c0_2 = arith.constant 0 : index
    %1 = vector.load %arg2[%c0_1, %c0_2] : memref<8x256xf32, #tpu.memory_space<vmem>>, vector<8x256xf32>
    tpu.vector_store %arg2[%c0_1, %c0_2], %0 {strides = array<i32>} : memref<8x256xf32, #tpu.memory_space<vmem>>, vector<8x256xf32>,
    return
  }
  func.func @transform_0(%arg0: i32) -> (i32, i32) {
    %c0_i32 = arith.constant 0 : i32
    %c0_i32_0 = arith.constant 0 : i32
    return %arg0, %c0_i32 : i32, i32
  }
  func.func @transform_1(%arg0: i32) -> (i32, i32) {
    %c0_i32 = arith.constant 0 : i32
    %c0_i32_0 = arith.constant 0 : i32
    return %arg0, %c0_i32 : i32, i32
  }
}

</mosaic_0001>

<bundles_post_ra>
// kernel: _flatten_dma_jit.1
= control target key start
LH: loop header
LB: loop body
LE: loop exit
PB: predicated region body
PF: predicated region fallthrough
CT: control target
= control target key end

     0   :  { %s77_s0 = inlined_call_operand.vmem [shape: f32[2,1024], index: 0, kind: input, shape index: {}]   ;;  %s78_s1 = inlined_call_operand.hbm [shape: f32[2,1024], index: 1, kind: output, shape index: {}]  }
   0x1   :  { %s13_s8 = sshll.u32 %s77_s0, 4  ;;  %s14_s8 = int_to_ptr.vmem [resolvable:$true] %s13_s8 }
   0x2   :  { %s28_s9 = scalar_lea.vmem %s14_s8, 256  ;;  %p33_p1 = scmp.lt.s32.totalorder %s14_s8, %s14_s8 }
   0x3   :  { %p29_p0 = scmp.ne.s32.totalorder %s14_s8, %s28_s9  ;;  %p34_p2 = scmp.lt.s32.totalorder %s28_s9, %s28_s9 }
   0x5   :  { %p35_p3 = por %p34_p2, %p33_p1 }
   0x7   :  { %p36_p4 = pnand %p35_p3, %p29_p0 }
   0x9   :  { %39 = shalt.err (!%p36_p4)  }
   0xa   :  { %s40_s12 = scalar_lea.hbm %s78_s1, 256 }
   0xb   :  { %p41_p5 = scmp.ne.s32.totalorder %s78_s1, %s40_s12  ;;  %p44_p6 = scmp.lt.u32.totalorder %s40_s12, %s78_s1 }
   0xd   :  { %p46_p7 = pnand %p44_p6, %p41_p5 }
   0xf   :  { %49 = shalt.err (!%p46_p7)  }
  0x10   :  { %16 = dma.vmem_to_hbm [thread:$0]  %s14_s8, 256, %s78_s1, [#allocation2] }
  0x11   :  { %50 = dma.done.wait [#allocation2], 256 }
  0x12   :  { %51 = vsyncadd [#allocation2], 4294967040 }
  0x13   :  { %21 = vsyncmov [#allocation2] }
  0x16   :  { %s22_s18 = vpop.sfrf %21 }
  0x17   :  { %p27_p8 = scmp.ne.s32.totalorder %s22_s18, 0 }
  0x19   :  { %26 = shalt.err (%p27_p8)  }

// kernel: _flatten_tiled_jit.1
= control target key start
LH: loop header
LB: loop body
LE: loop exit
PB: predicated region body
PF: predicated region fallthrough
CT: control target
= control target key end

     0   :  { %s38_s0 = inlined_call_operand.vmem [shape: f32[8,256], index: 0, kind: input, shape index: {}]   ;;  %s39_s1 = inlined_call_operand.vmem [shape: f32[8,256], index: 1, kind: output, shape index: {}]  }
   0x1   :  { %v8_v0 = vld [vmem:[%s38_s0] sm:$0xff]  ;;  %v9_v1 = vld [vmem:[%s38_s0 + $0x8] sm:$0xff] }
   0x2   :  { %10 = vst [vmem:[%s39_s1] sm:$0xff] %v8_v0  ;;  %11 = vst [vmem:[%s39_s1 + $0x8] sm:$0xff] %v9_v1 }

</bundles_post_ra>
